<compile_context>
chip_gen: v7x
topology: tpu7x:2x2x1
jax: 0.10.0
libtpu: 0.0.40
codegen_flags: <defaults>
</compile_context>

<pallas_src>
import functools
import math

import jax
import jax.numpy as jnp
from jax import lax
from jax.experimental import pallas as pl
from jax.experimental.pallas import tpu as pltpu

_LANES = 128
_DEFAULT_BLOCK_B = 64 * 1024     # lanes per grid step (perf review: 32K-128K)
_MAX_BLOCK_B = 128 * 1024        # keeps double-buffered x+out tiles ~16 MiB
_COL_UNROLL = 4                  # in-kernel column-loop unroll factor


def _round_up(v, m):
    return ((v + m - 1) // m) * m


def _fma_layer(w_ref, b_ref, x_rows, *, relu):
    """One dense layer on a single 128-lane column, entirely on the VPU.

    w_ref : [in, out, 128]  lane-replicated nn.Linear weight (w_ref[k,o,:] == W[o,k])
    b_ref : [out, 128]      lane-replicated bias
    x_rows: [in, 128]       activation column (batch on the lane axis)
    returns [out, 128]
    """
    in_dim = w_ref.shape[0]
    acc = b_ref[...]                               # bias broadcast pre-done on host
    for k in range(in_dim):
        # Weight operand is already lane-replicated -> plain vmul, no XLU splat.
        acc = acc + w_ref[k] * x_rows[k:k + 1, :]
    if relu:
        acc = jnp.maximum(acc, 0.0)
    return acc


def _mlp_kernel(x_ref, w1_ref, b1_ref, w2_ref, b2_ref, w3_ref, b3_ref, o_ref):
    """x_ref: [6, bt] (batch on lanes) -> o_ref: [1, bt] sigmoid probabilities."""
    n_cols = x_ref.shape[1] // _LANES              # bt is always a multiple of 128

    def col_body(c, carry):
        col = pl.multiple_of(c * _LANES, _LANES)
        x_c = x_ref[:, pl.ds(col, _LANES)].astype(jnp.float32)      # [6, 128]
        h1 = _fma_layer(w1_ref, b1_ref, x_c, relu=True)             # [16, 128]
        h2 = _fma_layer(w2_ref, b2_ref, h1, relu=True)              # [8, 128]
        z = _fma_layer(w3_ref, b3_ref, h2, relu=False)              # [1, 128]
        o_ref[:, pl.ds(col, _LANES)] = jax.nn.sigmoid(z).astype(o_ref.dtype)
        return carry

    # Per-column live set is tiny; the loop bounds vreg live ranges even for
    # very large bt, keeping the VALU (not spill traffic) the binding slot.
    lax.fori_loop(0, n_cols, col_body, 0, unroll=min(_COL_UNROLL, n_cols))


def _pack_params(params):
    """Lane-replicate weights/biases so the kernel never lane-broadcasts on the XLU."""
    def pack_w(w):        # [out, in] (PyTorch layout) -> [in, out, 128]
        out_dim, in_dim = w.shape
        return jnp.broadcast_to(w.T[:, :, None], (in_dim, out_dim, _LANES))

    def pack_b(b):        # [out] -> [out, 128]
        b = jnp.reshape(b, (-1, 1))
        return jnp.broadcast_to(b, (b.shape[0], _LANES))

    return (pack_w(params["w1"]), pack_b(params["b1"]),
            pack_w(params["w2"]), pack_b(params["b2"]),
            pack_w(params["w3"]), pack_b(params["b3"]))


def _forward_features_major(xt, params, block_b):
    """xt: [6, B] float32 (batch on the fast axis). Returns [1, B] float32."""
    F, B = xt.shape
    assert F == 6, F

    # Lane block: large enough to amortize per-grid-step overhead, sized for
    # >= 2 grid steps whenever B allows (so "parallel" can shard over v7x's
    # 2 TensorCores), never below one 128-lane vreg, capped for VMEM safety.
    bt_cap = max(_LANES, min(_round_up(block_b, _LANES), _MAX_BLOCK_B))
    bt = min(bt_cap, max(_LANES, _round_up(pl.cdiv(B, 2), _LANES)))
    nb = pl.cdiv(B, bt)           # ragged tail block is masked by Pallas

    packed = _pack_params(params)

    # Weights/biases: full block, constant index_map -> VMEM-resident.
    def resident(a):
        return pl.BlockSpec(a.shape, lambda i, _n=a.ndim: (0,) * _n)

    in_specs = [pl.BlockSpec((F, bt), lambda i: (0, i))]     # x tile [6, bt]
    in_specs += [resident(p) for p in packed]

    out = pl.pallas_call(
        _mlp_kernel,
        grid=(nb,),
        in_specs=in_specs,
        out_specs=pl.BlockSpec((1, bt), lambda i: (0, i)),    # out tile [1, bt]
        out_shape=jax.ShapeDtypeStruct((1, B), jnp.float32),
        compiler_params=pltpu.CompilerParams(
            dimension_semantics=("parallel",),                # 2-TC sharding on v7x
            vmem_limit_bytes=32 * 1024 * 1024,                # safe on v7x 64 MiB VMEM
        ),
    )(xt, *packed)
    return out


@functools.partial(jax.jit, static_argnames=("block_b",))
def titanic_forward_features_major(xt, params, *, block_b=_DEFAULT_BLOCK_B):
    """Preferred entry: activations kept feature-major [6, B] upstream -> [1, B]."""
    return _forward_features_major(xt, params, block_b)


@functools.partial(jax.jit, static_argnames=("block_b",))
def titanic_forward(x, params, *, block_b=_DEFAULT_BLOCK_B):
    """PyTorch-layout entry: x [B, 6] -> [B, 1] survival probabilities.

    The x.T relayout is jitted together with the pallas_call (single pass, no
    separate pad pass); the final [1, B] -> [B, 1] fix-up is a free reshape."""
    B = x.shape[0]
    probs = _forward_features_major(x.T, params, block_b)
    return probs.reshape(B, 1)


def init_params(key):
    """PyTorch nn.Linear default init: U(-1/sqrt(fan_in), 1/sqrt(fan_in)).

    Weights in the PyTorch [out, in] layout, biases as [out]."""
    dims = [(6, 16), (16, 8), (8, 1)]
    params = {}
    for i, (fan_in, fan_out) in enumerate(dims, start=1):
        key, kw, kb = jax.random.split(key, 3)
        bound = 1.0 / math.sqrt(fan_in)
        params[f"w{i}"] = jax.random.uniform(
            kw, (fan_out, fan_in), jnp.float32, minval=-bound, maxval=bound)
        params[f"b{i}"] = jax.random.uniform(
            kb, (fan_out,), jnp.float32, minval=-bound, maxval=bound)
    return params


def _reference(x, p):
    h1 = jnp.maximum(x @ p["w1"].T + p["b1"], 0.0)
    h2 = jnp.maximum(h1 @ p["w2"].T + p["b2"], 0.0)
    return jax.nn.sigmoid(h2 @ p["w3"].T + p["b3"])


if __name__ == "__main__":
    key = jax.random.PRNGKey(0)
    key, kx = jax.random.split(key)
    params = init_params(key)

    # Small batch: single (ragged) block, nb == 1.
    x = jax.random.normal(kx, (8, 6), dtype=jnp.float32)
    out = jax.block_until_ready(titanic_forward(x, params))
    ref = _reference(x, params)
    assert out.shape == (8, 1), out.shape
    assert jnp.allclose(out, ref, atol=1e-5, rtol=1e-5), (out, ref)

    # Multi-step grid with a ragged tail block (300 = 2*128 + 44).
    key, kx2 = jax.random.split(key)
    x2 = jax.random.normal(kx2, (300, 6), dtype=jnp.float32)
    out2 = jax.block_until_ready(titanic_forward(x2, params, block_b=128))
    ref2 = _reference(x2, params)
    assert out2.shape == (300, 1), out2.shape
    assert jnp.allclose(out2, ref2, atol=1e-5, rtol=1e-5), (out2, ref2)

    # Multi-column in-kernel loop + ragged tail + feature-major entry point.
    key, kx3 = jax.random.split(key)
    x3 = jax.random.normal(kx3, (1037, 6), dtype=jnp.float32)
    out3 = jax.block_until_ready(
        titanic_forward_features_major(x3.T, params, block_b=512))
    ref3 = _reference(x3, params)
    assert out3.shape == (1, 1037), out3.shape
    assert jnp.allclose(out3.reshape(-1, 1), ref3, atol=1e-5, rtol=1e-5), (out3, ref3)

    print("KERNEL_OK")
</pallas_src>

<mosaic_0001>
module attributes {stable_mosaic.version = 11 : i64} {
  func.func @_mlp_kernel(%arg0: i32, %arg1: memref<6x128xf32, #tpu.memory_space<vmem>>, %arg2: memref<6x16x128xf32, #tpu.memory_space<vmem>>, %arg3: memref<16x128xf32, #tpu.memory_space<vmem>>, %arg4: memref<16x8x128xf32, #tpu.memory_space<vmem>>, %arg5: memref<8x128xf32, #tpu.memory_space<vmem>>, %arg6: memref<8x1x128xf32, #tpu.memory_space<vmem>>, %arg7: memref<1x128xf32, #tpu.memory_space<vmem>>, %arg8: memref<1x128xf32, #tpu.memory_space<vmem>>) attributes {dimension_semantics = [#tpu.dimension_semantics<parallel>], iteration_bounds = array<i64: 1>, scalar_prefetch = 0 : i64, scratch_operands = 0 : i64, tpu.core_type = #tpu.core_type<tc>, window_params = [{transform_indices = @transform_0, window_bounds = array<i64: 6, 128>}, {pipeline_mode = #tpu.pipeline_mode<synchronous>, transform_indices = @transform_1, window_bounds = array<i64: 6, 16, 128>}, {pipeline_mode = #tpu.pipeline_mode<synchronous>, transform_indices = @transform_2, window_bounds = array<i64: 16, 128>}, {pipeline_mode = #tpu.pipeline_mode<synchronous>, transform_indices = @transform_3, window_bounds = array<i64: 16, 8, 128>}, {pipeline_mode = #tpu.pipeline_mode<synchronous>, transform_indices = @transform_4, window_bounds = array<i64: 8, 128>}, {pipeline_mode = #tpu.pipeline_mode<synchronous>, transform_indices = @transform_5, window_bounds = array<i64: 8, 1, 128>}, {pipeline_mode = #tpu.pipeline_mode<synchronous>, transform_indices = @transform_6, window_bounds = array<i64: 1, 128>}, {transform_indices = @transform_7, window_bounds = array<i64: 1, 128>}]} {
    %c0_i32 = arith.constant 0 : i32
    %c128_i32 = arith.constant 128 : i32
    %0 = arith.muli %c0_i32, %c128_i32 : i32
    %1 = tpu.assume_multiple %0, 128 : i32
    %c0 = arith.constant 0 : index
    %2 = arith.index_cast %1 : i32 to index
    %3 = vector.load %arg1[%c0, %2] : memref<6x128xf32, #tpu.memory_space<vmem>>, vector<6x128xf32>
    %c0_0 = arith.constant 0 : index
    %c0_1 = arith.constant 0 : index
    %4 = vector.load %arg3[%c0_0, %c0_1] : memref<16x128xf32, #tpu.memory_space<vmem>>, vector<16x128xf32>
    %c0_2 = arith.constant 0 : index
    %c0_3 = arith.constant 0 : index
    %c0_4 = arith.constant 0 : index
    %5 = vector.load %arg2[%c0_2, %c0_3, %c0_4] : memref<6x16x128xf32, #tpu.memory_space<vmem>>, vector<1x16x128xf32>
    %6 = vector.shape_cast %5 : vector<1x16x128xf32> to vector<16x128xf32>
    %7 = vector.extract_strided_slice %3 {offsets = [0, 0], sizes = [1, 128], strides = [1, 1]} : vector<6x128xf32> to vector<1x128xf32>
    %8 = vector.broadcast %7 : vector<1x128xf32> to vector<16x128xf32>
    %9 = arith.mulf %6, %8 : vector<16x128xf32>
    %10 = arith.addf %4, %9 : vector<16x128xf32>
    %c1 = arith.constant 1 : index
    %c0_5 = arith.constant 0 : index
    %c0_6 = arith.constant 0 : index
    %11 = vector.load %arg2[%c1, %c0_5, %c0_6] : memref<6x16x128xf32, #tpu.memory_space<vmem>>, vector<1x16x128xf32>
    %12 = vector.shape_cast %11 : vector<1x16x128xf32> to vector<16x128xf32>
    %13 = vector.extract_strided_slice %3 {offsets = [1, 0], sizes = [1, 128], strides = [1, 1]} : vector<6x128xf32> to vector<1x128xf32>
    %14 = vector.broadcast %13 : vector<1x128xf32> to vector<16x128xf32>
    %15 = arith.mulf %12, %14 : vector<16x128xf32>
    %16 = arith.addf %10, %15 : vector<16x128xf32>
    %c2 = arith.constant 2 : index
    %c0_7 = arith.constant 0 : index
    %c0_8 = arith.constant 0 : index
    %17 = vector.load %arg2[%c2, %c0_7, %c0_8] : memref<6x16x128xf32, #tpu.memory_space<vmem>>, vector<1x16x128xf32>
    %18 = vector.shape_cast %17 : vector<1x16x128xf32> to vector<16x128xf32>
    %19 = vector.extract_strided_slice %3 {offsets = [2, 0], sizes = [1, 128], strides = [1, 1]} : vector<6x128xf32> to vector<1x128xf32>
    %20 = vector.broadcast %19 : vector<1x128xf32> to vector<16x128xf32>
    %21 = arith.mulf %18, %20 : vector<16x128xf32>
    %22 = arith.addf %16, %21 : vector<16x128xf32>
    %c3 = arith.constant 3 : index
    %c0_9 = arith.constant 0 : index
    %c0_10 = arith.constant 0 : index
    %23 = vector.load %arg2[%c3, %c0_9, %c0_10] : memref<6x16x128xf32, #tpu.memory_space<vmem>>, vector<1x16x128xf32>
    %24 = vector.shape_cast %23 : vector<1x16x128xf32> to vector<16x128xf32>
    %25 = vector.extract_strided_slice %3 {offsets = [3, 0], sizes = [1, 128], strides = [1, 1]} : vector<6x128xf32> to vector<1x128xf32>
    %26 = vector.broadcast %25 : vector<1x128xf32> to vector<16x128xf32>
    %27 = arith.mulf %24, %26 : vector<16x128xf32>
    %28 = arith.addf %22, %27 : vector<16x128xf32>
    %c4 = arith.constant 4 : index
    %c0_11 = arith.constant 0 : index
    %c0_12 = arith.constant 0 : index
    %29 = vector.load %arg2[%c4, %c0_11, %c0_12] : memref<6x16x128xf32, #tpu.memory_space<vmem>>, vector<1x16x128xf32>
    %30 = vector.shape_cast %29 : vector<1x16x128xf32> to vector<16x128xf32>
    %31 = vector.extract_strided_slice %3 {offsets = [4, 0], sizes = [1, 128], strides = [1, 1]} : vector<6x128xf32> to vector<1x128xf32>
    %32 = vector.broadcast %31 : vector<1x128xf32> to vector<16x128xf32>
    %33 = arith.mulf %30, %32 : vector<16x128xf32>
    %34 = arith.addf %28, %33 : vector<16x128xf32>
    %c5 = arith.constant 5 : index
    %c0_13 = arith.constant 0 : index
    %c0_14 = arith.constant 0 : index
    %35 = vector.load %arg2[%c5, %c0_13, %c0_14] : memref<6x16x128xf32, #tpu.memory_space<vmem>>, vector<1x16x128xf32>
    %36 = vector.shape_cast %35 : vector<1x16x128xf32> to vector<16x128xf32>
    %37 = vector.extract_strided_slice %3 {offsets = [5, 0], sizes = [1, 128], strides = [1, 1]} : vector<6x128xf32> to vector<1x128xf32>
    %38 = vector.broadcast %37 : vector<1x128xf32> to vector<16x128xf32>
    %39 = arith.mulf %36, %38 : vector<16x128xf32>
    %40 = arith.addf %34, %39 : vector<16x128xf32>
    %cst = arith.constant 0.000000e+00 : f32
    %41 = vector.broadcast %cst : f32 to vector<16x128xf32>
    %42 = arith.maximumf %40, %41 : vector<16x128xf32>
    %c0_15 = arith.constant 0 : index
    %c0_16 = arith.constant 0 : index
    %43 = vector.load %arg5[%c0_15, %c0_16] : memref<8x128xf32, #tpu.memory_space<vmem>>, vector<8x128xf32>
    %c0_17 = arith.constant 0 : index
    %c0_18 = arith.constant 0 : index
    %c0_19 = arith.constant 0 : index
    %44 = vector.load %arg4[%c0_17, %c0_18, %c0_19] : memref<16x8x128xf32, #tpu.memory_space<vmem>>, vector<1x8x128xf32>
    %45 = vector.shape_cast %44 : vector<1x8x128xf32> to vector<8x128xf32>
    %46 = vector.extract_strided_slice %42 {offsets = [0, 0], sizes = [1, 128], strides = [1, 1]} : vector<16x128xf32> to vector<1x128xf32>
    %47 = vector.broadcast %46 : vector<1x128xf32> to vector<8x128xf32>
    %48 = arith.mulf %45, %47 : vector<8x128xf32>
    %49 = arith.addf %43, %48 : vector<8x128xf32>
    %c1_20 = arith.constant 1 : index
    %c0_21 = arith.constant 0 : index
    %c0_22 = arith.constant 0 : index
    %50 = vector.load %arg4[%c1_20, %c0_21, %c0_22] : memref<16x8x128xf32, #tpu.memory_space<vmem>>, vector<1x8x128xf32>
    %51 = vector.shape_cast %50 : vector<1x8x128xf32> to vector<8x128xf32>
    %52 = vector.extract_strided_slice %42 {offsets = [1, 0], sizes = [1, 128], strides = [1, 1]} : vector<16x128xf32> to vector<1x128xf32>
    %53 = vector.broadcast %52 : vector<1x128xf32> to vector<8x128xf32>
    %54 = arith.mulf %51, %53 : vector<8x128xf32>
    %55 = arith.addf %49, %54 : vector<8x128xf32>
    %c2_23 = arith.constant 2 : index
    %c0_24 = arith.constant 0 : index
    %c0_25 = arith.constant 0 : index
    %56 = vector.load %arg4[%c2_23, %c0_24, %c0_25] : memref<16x8x128xf32, #tpu.memory_space<vmem>>, vector<1x8x128xf32>
    %57 = vector.shape_cast %56 : vector<1x8x128xf32> to vector<8x128xf32>
    %58 = vector.extract_strided_slice %42 {offsets = [2, 0], sizes = [1, 128], strides = [1, 1]} : vector<16x128xf32> to vector<1x128xf32>
    %59 = vector.broadcast %58 : vector<1x128xf32> to vector<8x128xf32>
    %60 = arith.mulf %57, %59 : vector<8x128xf32>
    %61 = arith.addf %55, %60 : vector<8x128xf32>
    %c3_26 = arith.constant 3 : index
    %c0_27 = arith.constant 0 : index
    %c0_28 = arith.constant 0 : index
    %62 = vector.load %arg4[%c3_26, %c0_27, %c0_28] : memref<16x8x128xf32, #tpu.memory_space<vmem>>, vector<1x8x128xf32>
    %63 = vector.shape_cast %62 : vector<1x8x128xf32> to vector<8x128xf32>
    %64 = vector.extract_strided_slice %42 {offsets = [3, 0], sizes = [1, 128], strides = [1, 1]} : vector<16x128xf32> to vector<1x128xf32>
    %65 = vector.broadcast %64 : vector<1x128xf32> to vector<8x128xf32>
    %66 = arith.mulf %63, %65 : vector<8x128xf32>
    %67 = arith.addf %61, %66 : vector<8x128xf32>
    %c4_29 = arith.constant 4 : index
    %c0_30 = arith.constant 0 : index
    %c0_31 = arith.constant 0 : index
    %68 = vector.load %arg4[%c4_29, %c0_30, %c0_31] : memref<16x8x128xf32, #tpu.memory_space<vmem>>, vector<1x8x128xf32>
    %69 = vector.shape_cast %68 : vector<1x8x128xf32> to vector<8x128xf32>
    %70 = vector.extract_strided_slice %42 {offsets = [4, 0], sizes = [1, 128], strides = [1, 1]} : vector<16x128xf32> to vector<1x128xf32>
    %71 = vector.broadcast %70 : vector<1x128xf32> to vector<8x128xf32>
    %72 = arith.mulf %69, %71 : vector<8x128xf32>
    %73 = arith.addf %67, %72 : vector<8x128xf32>
    %c5_32 = arith.constant 5 : index
    %c0_33 = arith.constant 0 : index
    %c0_34 = arith.constant 0 : index
    %74 = vector.load %arg4[%c5_32, %c0_33, %c0_34] : memref<16x8x128xf32, #tpu.memory_space<vmem>>, vector<1x8x128xf32>
    %75 = vector.shape_cast %74 : vector<1x8x128xf32> to vector<8x128xf32>
    %76 = vector.extract_strided_slice %42 {offsets = [5, 0], sizes = [1, 128], strides = [1, 1]} : vector<16x128xf32> to vector<1x128xf32>
    %77 = vector.broadcast %76 : vector<1x128xf32> to vector<8x128xf32>
    %78 = arith.mulf %75, %77 : vector<8x128xf32>
    %79 = arith.addf %73, %78 : vector<8x128xf32>
    %c6 = arith.constant 6 : index
    %c0_35 = arith.constant 0 : index
    %c0_36 = arith.constant 0 : index
    %80 = vector.load %arg4[%c6, %c0_35, %c0_36] : memref<16x8x128xf32, #tpu.memory_space<vmem>>, vector<1x8x128xf32>
    %81 = vector.shape_cast %80 : vector<1x8x128xf32> to vector<8x128xf32>
    %82 = vector.extract_strided_slice %42 {offsets = [6, 0], sizes = [1, 128], strides = [1, 1]} : vector<16x128xf32> to vector<1x128xf32>
    %83 = vector.broadcast %82 : vector<1x128xf32> to vector<8x128xf32>
    %84 = arith.mulf %81, %83 : vector<8x128xf32>
    %85 = arith.addf %79, %84 : vector<8x128xf32>
    %c7 = arith.constant 7 : index
    %c0_37 = arith.constant 0 : index
    %c0_38 = arith.constant 0 : index
    %86 = vector.load %arg4[%c7, %c0_37, %c0_38] : memref<16x8x128xf32, #tpu.memory_space<vmem>>, vector<1x8x128xf32>
    %87 = vector.shape_cast %86 : vector<1x8x128xf32> to vector<8x128xf32>
    %88 = vector.extract_strided_slice %42 {offsets = [7, 0], sizes = [1, 128], strides = [1, 1]} : vector<16x128xf32> to vector<1x128xf32>
    %89 = vector.broadcast %88 : vector<1x128xf32> to vector<8x128xf32>
    %90 = arith.mulf %87, %89 : vector<8x128xf32>
    %91 = arith.addf %85, %90 : vector<8x128xf32>
    %c8 = arith.constant 8 : index
    %c0_39 = arith.constant 0 : index
    %c0_40 = arith.constant 0 : index
    %92 = vector.load %arg4[%c8, %c0_39, %c0_40] : memref<16x8x128xf32, #tpu.memory_space<vmem>>, vector<1x8x128xf32>
    %93 = vector.shape_cast %92 : vector<1x8x128xf32> to vector<8x128xf32>
    %94 = vector.extract_strided_slice %42 {offsets = [8, 0], sizes = [1, 128], strides = [1, 1]} : vector<16x128xf32> to vector<1x128xf32>
    %95 = vector.broadcast %94 : vector<1x128xf32> to vector<8x128xf32>
    %96 = arith.mulf %93, %95 : vector<8x128xf32>
    %97 = arith.addf %91, %96 : vector<8x128xf32>
    %c9 = arith.constant 9 : index
    %c0_41 = arith.constant 0 : index
    %c0_42 = arith.constant 0 : index
    %98 = vector.load %arg4[%c9, %c0_41, %c0_42] : memref<16x8x128xf32, #tpu.memory_space<vmem>>, vector<1x8x128xf32>
    %99 = vector.shape_cast %98 : vector<1x8x128xf32> to vector<8x128xf32>
    %100 = vector.extract_strided_slice %42 {offsets = [9, 0], sizes = [1, 128], strides = [1, 1]} : vector<16x128xf32> to vector<1x128xf32>
    %101 = vector.broadcast %100 : vector<1x128xf32> to vector<8x128xf32>
    %102 = arith.mulf %99, %101 : vector<8x128xf32>
    %103 = arith.addf %97, %102 : vector<8x128xf32>
    %c10 = arith.constant 10 : index
    %c0_43 = arith.constant 0 : index
    %c0_44 = arith.constant 0 : index
    %104 = vector.load %arg4[%c10, %c0_43, %c0_44] : memref<16x8x128xf32, #tpu.memory_space<vmem>>, vector<1x8x128xf32>
    %105 = vector.shape_cast %104 : vector<1x8x128xf32> to vector<8x128xf32>
    %106 = vector.extract_strided_slice %42 {offsets = [10, 0], sizes = [1, 128], strides = [1, 1]} : vector<16x128xf32> to vector<1x128xf32>
    %107 = vector.broadcast %106 : vector<1x128xf32> to vector<8x128xf32>
    %108 = arith.mulf %105, %107 : vector<8x128xf32>
    %109 = arith.addf %103, %108 : vector<8x128xf32>
    %c11 = arith.constant 11 : index
    %c0_45 = arith.constant 0 : index
    %c0_46 = arith.constant 0 : index
    %110 = vector.load %arg4[%c11, %c0_45, %c0_46] : memref<16x8x128xf32, #tpu.memory_space<vmem>>, vector<1x8x128xf32>
    %111 = vector.shape_cast %110 : vector<1x8x128xf32> to vector<8x128xf32>
    %112 = vector.extract_strided_slice %42 {offsets = [11, 0], sizes = [1, 128], strides = [1, 1]} : vector<16x128xf32> to vector<1x128xf32>
    %113 = vector.broadcast %112 : vector<1x128xf32> to vector<8x128xf32>
    %114 = arith.mulf %111, %113 : vector<8x128xf32>
    %115 = arith.addf %109, %114 : vector<8x128xf32>
    %c12 = arith.constant 12 : index
    %c0_47 = arith.constant 0 : index
    %c0_48 = arith.constant 0 : index
    %116 = vector.load %arg4[%c12, %c0_47, %c0_48] : memref<16x8x128xf32, #tpu.memory_space<vmem>>, vector<1x8x128xf32>
    %117 = vector.shape_cast %116 : vector<1x8x128xf32> to vector<8x128xf32>
    %118 = vector.extract_strided_slice %42 {offsets = [12, 0], sizes = [1, 128], strides = [1, 1]} : vector<16x128xf32> to vector<1x128xf32>
    %119 = vector.broadcast %118 : vector<1x128xf32> to vector<8x128xf32>
    %120 = arith.mulf %117, %119 : vector<8x128xf32>
    %121 = arith.addf %115, %120 : vector<8x128xf32>
    %c13 = arith.constant 13 : index
    %c0_49 = arith.constant 0 : index
    %c0_50 = arith.constant 0 : index
    %122 = vector.load %arg4[%c13, %c0_49, %c0_50] : memref<16x8x128xf32, #tpu.memory_space<vmem>>, vector<1x8x128xf32>
    %123 = vector.shape_cast %122 : vector<1x8x128xf32> to vector<8x128xf32>
    %124 = vector.extract_strided_slice %42 {offsets = [13, 0], sizes = [1, 128], strides = [1, 1]} : vector<16x128xf32> to vector<1x128xf32>
    %125 = vector.broadcast %124 : vector<1x128xf32> to vector<8x128xf32>
    %126 = arith.mulf %123, %125 : vector<8x128xf32>
    %127 = arith.addf %121, %126 : vector<8x128xf32>
    %c14 = arith.constant 14 : index
    %c0_51 = arith.constant 0 : index
    %c0_52 = arith.constant 0 : index
    %128 = vector.load %arg4[%c14, %c0_51, %c0_52] : memref<16x8x128xf32, #tpu.memory_space<vmem>>, vector<1x8x128xf32>
    %129 = vector.shape_cast %128 : vector<1x8x128xf32> to vector<8x128xf32>
    %130 = vector.extract_strided_slice %42 {offsets = [14, 0], sizes = [1, 128], strides = [1, 1]} : vector<16x128xf32> to vector<1x128xf32>
    %131 = vector.broadcast %130 : vector<1x128xf32> to vector<8x128xf32>
    %132 = arith.mulf %129, %131 : vector<8x128xf32>
    %133 = arith.addf %127, %132 : vector<8x128xf32>
    %c15 = arith.constant 15 : index
    %c0_53 = arith.constant 0 : index
    %c0_54 = arith.constant 0 : index
    %134 = vector.load %arg4[%c15, %c0_53, %c0_54] : memref<16x8x128xf32, #tpu.memory_space<vmem>>, vector<1x8x128xf32>
    %135 = vector.shape_cast %134 : vector<1x8x128xf32> to vector<8x128xf32>
    %136 = vector.extract_strided_slice %42 {offsets = [15, 0], sizes = [1, 128], strides = [1, 1]} : vector<16x128xf32> to vector<1x128xf32>
    %137 = vector.broadcast %136 : vector<1x128xf32> to vector<8x128xf32>
    %138 = arith.mulf %135, %137 : vector<8x128xf32>
    %139 = arith.addf %133, %138 : vector<8x128xf32>
    %cst_55 = arith.constant 0.000000e+00 : f32
    %140 = vector.broadcast %cst_55 : f32 to vector<8x128xf32>
    %141 = arith.maximumf %139, %140 : vector<8x128xf32>
    %c0_56 = arith.constant 0 : index
    %c0_57 = arith.constant 0 : index
    %142 = vector.load %arg7[%c0_56, %c0_57] : memref<1x128xf32, #tpu.memory_space<vmem>>, vector<1x128xf32>
    %c0_58 = arith.constant 0 : index
    %c0_59 = arith.constant 0 : index
    %c0_60 = arith.constant 0 : index
    %143 = vector.load %arg6[%c0_58, %c0_59, %c0_60] : memref<8x1x128xf32, #tpu.memory_space<vmem>>, vector<1x1x128xf32>
    %144 = vector.shape_cast %143 : vector<1x1x128xf32> to vector<1x128xf32>
    %145 = vector.extract_strided_slice %141 {offsets = [0, 0], sizes = [1, 128], strides = [1, 1]} : vector<8x128xf32> to vector<1x128xf32>
    %146 = arith.mulf %144, %145 : vector<1x128xf32>
    %147 = arith.addf %142, %146 : vector<1x128xf32>
    %c1_61 = arith.constant 1 : index
    %c0_62 = arith.constant 0 : index
    %c0_63 = arith.constant 0 : index
    %148 = vector.load %arg6[%c1_61, %c0_62, %c0_63] : memref<8x1x128xf32, #tpu.memory_space<vmem>>, vector<1x1x128xf32>
    %149 = vector.shape_cast %148 : vector<1x1x128xf32> to vector<1x128xf32>
    %150 = vector.extract_strided_slice %141 {offsets = [1, 0], sizes = [1, 128], strides = [1, 1]} : vector<8x128xf32> to vector<1x128xf32>
    %151 = arith.mulf %149, %150 : vector<1x128xf32>
    %152 = arith.addf %147, %151 : vector<1x128xf32>
    %c2_64 = arith.constant 2 : index
    %c0_65 = arith.constant 0 : index
    %c0_66 = arith.constant 0 : index
    %153 = vector.load %arg6[%c2_64, %c0_65, %c0_66] : memref<8x1x128xf32, #tpu.memory_space<vmem>>, vector<1x1x128xf32>
    %154 = vector.shape_cast %153 : vector<1x1x128xf32> to vector<1x128xf32>
    %155 = vector.extract_strided_slice %141 {offsets = [2, 0], sizes = [1, 128], strides = [1, 1]} : vector<8x128xf32> to vector<1x128xf32>
    %156 = arith.mulf %154, %155 : vector<1x128xf32>
    %157 = arith.addf %152, %156 : vector<1x128xf32>
    %c3_67 = arith.constant 3 : index
    %c0_68 = arith.constant 0 : index
    %c0_69 = arith.constant 0 : index
    %158 = vector.load %arg6[%c3_67, %c0_68, %c0_69] : memref<8x1x128xf32, #tpu.memory_space<vmem>>, vector<1x1x128xf32>
    %159 = vector.shape_cast %158 : vector<1x1x128xf32> to vector<1x128xf32>
    %160 = vector.extract_strided_slice %141 {offsets = [3, 0], sizes = [1, 128], strides = [1, 1]} : vector<8x128xf32> to vector<1x128xf32>
    %161 = arith.mulf %159, %160 : vector<1x128xf32>
    %162 = arith.addf %157, %161 : vector<1x128xf32>
    %c4_70 = arith.constant 4 : index
    %c0_71 = arith.constant 0 : index
    %c0_72 = arith.constant 0 : index
    %163 = vector.load %arg6[%c4_70, %c0_71, %c0_72] : memref<8x1x128xf32, #tpu.memory_space<vmem>>, vector<1x1x128xf32>
    %164 = vector.shape_cast %163 : vector<1x1x128xf32> to vector<1x128xf32>
    %165 = vector.extract_strided_slice %141 {offsets = [4, 0], sizes = [1, 128], strides = [1, 1]} : vector<8x128xf32> to vector<1x128xf32>
    %166 = arith.mulf %164, %165 : vector<1x128xf32>
    %167 = arith.addf %162, %166 : vector<1x128xf32>
    %c5_73 = arith.constant 5 : index
    %c0_74 = arith.constant 0 : index
    %c0_75 = arith.constant 0 : index
    %168 = vector.load %arg6[%c5_73, %c0_74, %c0_75] : memref<8x1x128xf32, #tpu.memory_space<vmem>>, vector<1x1x128xf32>
    %169 = vector.shape_cast %168 : vector<1x1x128xf32> to vector<1x128xf32>
    %170 = vector.extract_strided_slice %141 {offsets = [5, 0], sizes = [1, 128], strides = [1, 1]} : vector<8x128xf32> to vector<1x128xf32>
    %171 = arith.mulf %169, %170 : vector<1x128xf32>
    %172 = arith.addf %167, %171 : vector<1x128xf32>
    %c6_76 = arith.constant 6 : index
    %c0_77 = arith.constant 0 : index
    %c0_78 = arith.constant 0 : index
    %173 = vector.load %arg6[%c6_76, %c0_77, %c0_78] : memref<8x1x128xf32, #tpu.memory_space<vmem>>, vector<1x1x128xf32>
    %174 = vector.shape_cast %173 : vector<1x1x128xf32> to vector<1x128xf32>
    %175 = vector.extract_strided_slice %141 {offsets = [6, 0], sizes = [1, 128], strides = [1, 1]} : vector<8x128xf32> to vector<1x128xf32>
    %176 = arith.mulf %174, %175 : vector<1x128xf32>
    %177 = arith.addf %172, %176 : vector<1x128xf32>
    %c7_79 = arith.constant 7 : index
    %c0_80 = arith.constant 0 : index
    %c0_81 = arith.constant 0 : index
    %178 = vector.load %arg6[%c7_79, %c0_80, %c0_81] : memref<8x1x128xf32, #tpu.memory_space<vmem>>, vector<1x1x128xf32>
    %179 = vector.shape_cast %178 : vector<1x1x128xf32> to vector<1x128xf32>
    %180 = vector.extract_strided_slice %141 {offsets = [7, 0], sizes = [1, 128], strides = [1, 1]} : vector<8x128xf32> to vector<1x128xf32>
    %181 = arith.mulf %179, %180 : vector<1x128xf32>
    %182 = arith.addf %177, %181 : vector<1x128xf32>
    %183 = arith.negf %182 : vector<1x128xf32>
    %184 = math.exp %183 : vector<1x128xf32>
    %cst_82 = arith.constant 1.000000e+00 : f32
    %185 = vector.broadcast %cst_82 : f32 to vector<1x128xf32>
    %186 = arith.addf %185, %184 : vector<1x128xf32>
    %187 = arith.divf %185, %186 : vector<1x128xf32>
    %c0_83 = arith.constant 0 : index
    %188 = arith.index_cast %1 : i32 to index
    %189 = vector.load %arg8[%c0_83, %188] : memref<1x128xf32, #tpu.memory_space<vmem>>, vector<1x128xf32>
    tpu.vector_store %arg8[%c0_83, %188], %187 {strides = array<i32>} : memref<1x128xf32, #tpu.memory_space<vmem>>, vector<1x128xf32>,
    %c1_i32 = arith.constant 1 : i32
    return
  }
  func.func @transform_0(%arg0: i32) -> (i32, i32) {
    %c0_i32 = arith.constant 0 : i32
    %c0_i32_0 = arith.constant 0 : i32
    return %c0_i32, %arg0 : i32, i32
  }
  func.func @transform_1(%arg0: i32) -> (i32, i32, i32) {
    %c0_i32 = arith.constant 0 : i32
    %c0_i32_0 = arith.constant 0 : i32
    %c0_i32_1 = arith.constant 0 : i32
    %c0_i32_2 = arith.constant 0 : i32
    return %c0_i32, %c0_i32_0, %c0_i32_1 : i32, i32, i32
  }
  func.func @transform_2(%arg0: i32) -> (i32, i32) {
    %c0_i32 = arith.constant 0 : i32
    %c0_i32_0 = arith.constant 0 : i32
    %c0_i32_1 = arith.constant 0 : i32
    return %c0_i32, %c0_i32_0 : i32, i32
  }
  func.func @transform_3(%arg0: i32) -> (i32, i32, i32) {
    %c0_i32 = arith.constant 0 : i32
    %c0_i32_0 = arith.constant 0 : i32
    %c0_i32_1 = arith.constant 0 : i32
    %c0_i32_2 = arith.constant 0 : i32
    return %c0_i32, %c0_i32_0, %c0_i32_1 : i32, i32, i32
  }
  func.func @transform_4(%arg0: i32) -> (i32, i32) {
    %c0_i32 = arith.constant 0 : i32
    %c0_i32_0 = arith.constant 0 : i32
    %c0_i32_1 = arith.constant 0 : i32
    return %c0_i32, %c0_i32_0 : i32, i32
  }
  func.func @transform_5(%arg0: i32) -> (i32, i32, i32) {
    %c0_i32 = arith.constant 0 : i32
    %c0_i32_0 = arith.constant 0 : i32
    %c0_i32_1 = arith.constant 0 : i32
    %c0_i32_2 = arith.constant 0 : i32
    return %c0_i32, %c0_i32_0, %c0_i32_1 : i32, i32, i32
  }
  func.func @transform_6(%arg0: i32) -> (i32, i32) {
    %c0_i32 = arith.constant 0 : i32
    %c0_i32_0 = arith.constant 0 : i32
    %c0_i32_1 = arith.constant 0 : i32
    return %c0_i32, %c0_i32_0 : i32, i32
  }
  func.func @transform_7(%arg0: i32) -> (i32, i32) {
    %c0_i32 = arith.constant 0 : i32
    %c0_i32_0 = arith.constant 0 : i32
    return %c0_i32, %arg0 : i32, i32
  }
}

</mosaic_0001>

<bundles_post_ra>
// kernel: titanic_forward.1
= control target key start
LH: loop header
LB: loop body
LE: loop exit
PB: predicated region body
PF: predicated region fallthrough
CT: control target
= control target key end

     0   :  { %12 = vsyncpa [#allocation3], 0  ;;  %v32_v0 = vlaneseq  ;;  %s400_s25 = smov [#allocation2]   ;;  %s617_s0 = inlined_call_operand.vmem [shape: f32[6,8], index: 0, kind: input, shape index: {}]   ;;  %s618_s1 = inlined_call_operand.vmem [shape: f32[6,16,128], index: 1, kind: input, shape index: {}]   ;;  %s619_s2 = inlined_call_operand.vmem [shape: f32[16,128], index: 2, kind: input, shape index: {}]   ;;  %s620_s3 = inlined_call_operand.vmem [shape: f32[16,8,128], index: 3, kind: input, shape index: {}]   ;;  %s621_s4 = inlined_call_operand.vmem [shape: f32[8,128], index: 4, kind: input, shape index: {}]   ;;  %s622_s5 = inlined_call_operand.vmem [shape: f32[8,1,128], index: 5, kind: input, shape index: {}]   ;;  %s623_s6 = inlined_call_operand.vmem [shape: f32[1,128], index: 6, kind: input, shape index: {}]   ;;  %s624_s7 = inlined_call_operand.hbm [shape: f32[1,8], index: 7, kind: output, shape index: {}]  }
   0x1   :  { %v27_v2 = vld [vmem:[%s617_s0] sm:$0x3f]  ;;  %v31_v8 = vld [vmem:[%s618_s1 + $0x8] sm:$0xff]  ;;  %v336_v9 = vld [vmem:[%s618_s1 + $0x10] sm:$0xff]  ;;  %s328_s26 = sshll.u32 %s400_s25, 4  ;;  %s329_s26 = int_to_ptr.vmem [resolvable:$true] %s328_s26 }
   0x2   :  { %v441_v1 = vshrl.u32 %v32_v0, 7  ;;  %v30_v3 = vld [vmem:[%s618_s1] sm:$0xff]  ;;  %v337_v10 = vld [vmem:[%s618_s1 + $0x18] sm:$0xff]  ;;  %v29_v16 = vld [vmem:[%s619_s2 + $0x8] sm:$0xff]  ;;  %s375_s27 = scalar_lea.vmem %s329_s26, 16  ;;  %s379_s28 = scalar_lea.vmem %s329_s26, 32 }
   0x3   :  { %v28_v15 = vld [vmem:[%s619_s2] sm:$0xff]  ;;  %v339_v24 = vld [vmem:[%s618_s1 + $0x28] sm:$0xff]  ;;  %v340_v25 = vld [vmem:[%s618_s1 + $0x30] sm:$0xff]  ;;  %p376_p0 = scmp.ne.s32.totalorder %s329_s26, %s375_s27  ;;  %p380_p1 = scmp.lt.s32.totalorder %s329_s26, %s329_s26 }
   0x4   :  { %v450_v4 = vsub.s32 0, %v441_v1  ;;  %v453_v5 = vsub.s32 1, %v441_v1  ;;  %v456_v6 = vsub.s32 2, %v441_v1  ;;  %v459_v7 = vsub.s32 3, %v441_v1  ;;  %v338_v17 = vld [vmem:[%s618_s1 + $0x20] sm:$0xff]  ;;  %v341_v36 = vld [vmem:[%s618_s1 + $0x38] sm:$0xff]  ;;  %p381_p2 = scmp.lt.s32.totalorder %s379_s28, %s375_s27 }
   0x5   :  { %v474_v14 = vsub.s32 4, %v441_v1  ;;  %v487_v19 = vsub.s32 5, %v441_v1  ;;  %v342_v30 = vld [vmem:[%s618_s1 + $0x40] sm:$0xff]  ;;  %v344_v37 = vld [vmem:[%s618_s1 + $0x50] sm:$0xff]  ;;  %v343_v44 = vld [vmem:[%s618_s1 + $0x48] sm:$0xff]  ;;  %v149_v0 = vsub.s32 6, %v441_v1 }
   0x6   :  { %v35_v11 = vrot.slane %v27_v2, %v450_v4  ;;  %v46_v12 = vrot.slane %v27_v2, %v453_v5  ;;  %v57_v13 = vrot.slane %v27_v2, %v456_v6  ;;  %v68_v18 = vrot.slane %v27_v2, %v459_v7  ;;  %v345_v48 = vld [vmem:[%s618_s1 + $0x58] sm:$0xff]  ;;  %v98_v52 = vld [vmem:[%s620_s3] sm:$0xff]  ;;  %v346_v53 = vld [vmem:[%s620_s3 + $0x8] sm:$0xff]  ;;  %p382_p3 = por %p381_p2, %p380_p1 }
   0x7   :  { %v79_v29 = vrot.slane %v27_v2, %v474_v14  ;;  %v90_v31 = vrot.slane %v27_v2, %v487_v19  ;;  %v97_v58 = vld [vmem:[%s621_s4] sm:$0xff]  ;;  %v347_v59 = vld [vmem:[%s620_s3 + $0x10] sm:$0xff]  ;;  %v348_v63 = vld [vmem:[%s620_s3 + $0x18] sm:$0xff] }
   0x8   :  { %v36_v20 = vmul.f32 %v35_v11, %v30_v3  ;;  %v37_v21 = vmul.f32 %v35_v11, %v31_v8  ;;  %v47_v22 = vmul.f32 %v336_v9, %v46_v12  ;;  %v48_v23 = vmul.f32 %v337_v10, %v46_v12  ;;  %v349_v10 = vld [vmem:[%s620_s3 + $0x20] sm:$0xff]  ;;  %p383_p4 = pnand %p382_p3, %p376_p0 }
   0x9   :  { %v58_v28 = vmul.f32 %v338_v17, %v57_v13  ;;  %v59_v34 = vmul.f32 %v339_v24, %v57_v13  ;;  %v69_v35 = vmul.f32 %v340_v25, %v68_v18  ;;  %v80_v39 = vmul.f32 %v342_v30, %v79_v29  ;;  %v353_v30 = vld [vmem:[%s620_s3 + $0x40] sm:$0xff] }
   0xa   :  { %v38_v26 = vadd.f32 %v36_v20, %v28_v15  ;;  %v39_v27 = vadd.f32 %v37_v21, %v29_v16  ;;  %v70_v41 = vmul.f32 %v341_v36, %v68_v18  ;;  %v91_v43 = vmul.f32 %v344_v37, %v90_v31  ;;  %v350_v16 = vld [vmem:[%s620_s3 + $0x28] sm:$0xff] }
   0xb   :  { %v81_v47 = vmul.f32 %v343_v44, %v79_v29  ;;  %v92_v51 = vmul.f32 %v345_v48, %v90_v31  ;;  %v157_v15 = vsub.s32 7, %v441_v1 }
   0xc   :  { %v49_v32 = vadd.f32 %v47_v22, %v38_v26  ;;  %v50_v33 = vadd.f32 %v48_v23, %v39_v27  ;;  %v351_v22 = vld [vmem:[%s620_s3 + $0x30] sm:$0xff]  ;;  %v352_v26 = vld [vmem:[%s620_s3 + $0x38] sm:$0xff] }
   0xe   :  { %v60_v38 = vadd.f32 %v58_v28, %v49_v32  ;;  %v61_v40 = vadd.f32 %v59_v34, %v50_v33  ;;  %v354_v34 = vld [vmem:[%s620_s3 + $0x48] sm:$0xff] }
  0x10   :  { %v71_v42 = vadd.f32 %v69_v35, %v60_v38  ;;  %v72_v46 = vadd.f32 %v70_v41, %v61_v40 }
  0x12   :  { %v82_v45 = vadd.f32 %v80_v39, %v71_v42  ;;  %v83_v54 = vadd.f32 %v81_v47, %v72_v46 }
  0x14   :  { %v93_v49 = vadd.f32 %v91_v43, %v82_v45  ;;  %v94_v2 = vadd.f32 %v92_v51, %v83_v54 }
  0x16   :  { %v95_v50 = vmax.f32 %v93_v49, 0.0  ;;  %v96_v17 = vmax.f32 %v94_v2, 0.0 }
  0x18   :  { %v102_v55 = vrot.slane %v95_v50, %v450_v4  ;;  %v110_v56 = vrot.slane %v95_v50, %v453_v5  ;;  %v118_v57 = vrot.slane %v95_v50, %v456_v6  ;;  %v126_v62 = vrot.slane %v95_v50, %v459_v7 }
  0x19   :  { %v134_v9 = vrot.slane %v95_v50, %v474_v14  ;;  %v142_v13 = vrot.slane %v95_v50, %v487_v19  ;;  %v150_v21 = vrot.slane %v95_v50, %v149_v0  ;;  %v158_v25 = vrot.slane %v95_v50, %v157_v15  ;;  %v359_v50 = vld [vmem:[%s620_s3 + $0x70] sm:$0xff] }
  0x1a   :  { %v103_v60 = vmul.f32 %v102_v55, %v98_v52  ;;  %v111_v61 = vmul.f32 %v346_v53, %v110_v56  ;;  %v119_v8 = vmul.f32 %v347_v59, %v118_v57  ;;  %v127_v12 = vmul.f32 %v348_v63, %v126_v62  ;;  %v227_v63 = vld [vmem:[%s622_s5] sm:$0x1] }
  0x1b   :  { %v135_v20 = vmul.f32 %v349_v10, %v134_v9  ;;  %v143_v24 = vmul.f32 %v350_v16, %v142_v13  ;;  %v151_v28 = vmul.f32 %v351_v22, %v150_v21  ;;  %v166_v29 = vrot.slane %v96_v17, %v450_v4  ;;  %v355_v4 = vld [vmem:[%s620_s3 + $0x50] sm:$0xff]  ;;  %v226_v9 = vld [vmem:[%s623_s6] sm:$0x1]  ;;  %v361_v13 = vld [vmem:[%s622_s5 + $0x1] sm:$0x1] }
  0x1c   :  { %v104_v3 = vadd.f32 %v103_v60, %v97_v58  ;;  %v159_v32 = vmul.f32 %v352_v26, %v158_v25  ;;  %v174_v33 = vrot.slane %v96_v17, %v453_v5  ;;  %v182_v37 = vrot.slane %v96_v17, %v456_v6  ;;  %v356_v5 = vld [vmem:[%s620_s3 + $0x58] sm:$0xff]  ;;  %v357_v6 = vld [vmem:[%s620_s3 + $0x60] sm:$0xff] }
  0x1d   :  { %v167_v36 = vmul.f32 %v353_v30, %v166_v29  ;;  %v190_v40 = vrot.slane %v96_v17, %v459_v7  ;;  %v198_v43 = vrot.slane %v96_v17, %v474_v14  ;;  %v206_v46 = vrot.slane %v96_v17, %v487_v19  ;;  %v358_v7 = vld [vmem:[%s620_s3 + $0x68] sm:$0xff]  ;;  %v360_v19 = vld [vmem:[%s620_s3 + $0x78] sm:$0xff]  ;;  %v364_v25 = vld [vmem:[%s622_s5 + $0x4] sm:$0x1] }
  0x1e   :  { %v112_v11 = vadd.f32 %v111_v61, %v104_v3  ;;  %v175_v39 = vmul.f32 %v354_v34, %v174_v33  ;;  %v183_v42 = vmul.f32 %v355_v4, %v182_v37  ;;  %v214_v49 = vrot.slane %v96_v17, %v149_v0  ;;  %v365_v29 = vld [vmem:[%s622_s5 + $0x5] sm:$0x1]  ;;  %v366_v33 = vld [vmem:[%s622_s5 + $0x6] sm:$0x1]  ;;  %v367_v37 = vld [vmem:[%s622_s5 + $0x7] sm:$0x1] }
  0x1f   :  { %v191_v45 = vmul.f32 %v356_v5, %v190_v40  ;;  %v199_v48 = vmul.f32 %v357_v6, %v198_v43  ;;  %v207_v51 = vmul.f32 %v358_v7, %v206_v46  ;;  %v222_v52 = vrot.slane %v96_v17, %v157_v15 }
  0x20   :  { %v120_v18 = vadd.f32 %v119_v8, %v112_v11  ;;  %v399_v53 = vmov 1966171168   ;;  %v215_v56 = vmul.f32 %v359_v50, %v214_v49 }
  0x21   :  { %v234_v54 = vunpack.c.l.s4 %v399_v53  ;;  %v223_v58 = vmul.f32 %v360_v19, %v222_v52 }
  0x22   :  { %v128_v23 = vadd.f32 %v127_v12, %v120_v18 }
  0x23   :  { %v235_v59 = vunpack.c.0.s8 %v234_v54 }
  0x24   :  { %v136_v27 = vadd.f32 %v135_v20, %v128_v23  ;;  %v363_v20 = vld [vmem:[%s622_s5 + $0x3] sm:$0x1] }
  0x25   :  { %v238_v62 = vsub.s32 %v235_v59, %v441_v1  ;;  %v362_v1 = vld [vmem:[%s622_s5 + $0x2] sm:$0x1] }
  0x26   :  { %v144_v31 = vadd.f32 %v143_v24, %v136_v27 }
  0x28   :  { %v152_v35 = vadd.f32 %v151_v28, %v144_v31 }
  0x2a   :  { %v160_v38 = vadd.f32 %v159_v32, %v152_v35 }
  0x2c   :  { %v168_v41 = vadd.f32 %v167_v36, %v160_v38 }
  0x2e   :  { %v176_v44 = vadd.f32 %v175_v39, %v168_v41 }
  0x30   :  { %v184_v47 = vadd.f32 %v183_v42, %v176_v44 }
  0x32   :  { %v192_v14 = vadd.f32 %v191_v45, %v184_v47 }
  0x34   :  { %v200_v55 = vadd.f32 %v199_v48, %v192_v14 }
  0x36   :  { %v208_v57 = vadd.f32 %v207_v51, %v200_v55 }
  0x38   :  { %v216_v60 = vadd.f32 %v215_v56, %v208_v57 }
  0x3a   :  { %v224_v61 = vadd.f32 %v223_v58, %v216_v60 }
  0x3c   :  { %v225_v0 = vmax.f32 %v224_v61, 0.0 }
  0x3e   :  { %v228_v2 = vmul.f32 %v227_v63, %v225_v0  ;;  %v239_v3 = vrot.slane %v225_v0, %v238_v62  ;;  %v272_v8 = vcombine.high %v225_v0, %v225_v0 }
  0x40   :  { %v240_v10 = vcombine.high %v239_v3, %v239_v3  ;;  %v247_v11 = vrot.slane %v239_v3, %v238_v62  ;;  %v279_v12 = vrot.slane %v272_v8, %v238_v62  ;;  %v229_v15 = vadd.f32 %v228_v2, %v226_v9 }
  0x42   :  { %v254_v16 = vrot.slane %v240_v10, %v238_v62  ;;  %v260_v17 = vcombine.high %v247_v11, %v247_v11  ;;  %v292_v18 = vcombine.high %v279_v12, %v279_v12  ;;  %v286_v24 = vrot.slane %v279_v12, %v238_v62 }
  0x44   :  { %v256_v21 = vmul.f32 %v361_v13, %v254_v16  ;;  %v262_v22 = vmul.f32 %v362_v1, %v260_v17  ;;  %v266_v23 = vcombine.high %v254_v16, %v254_v16  ;;  %v299_v28 = vrot.slane %v292_v18, %v238_v62 }
  0x45   :  { %v288_v31 = vmul.f32 %v364_v25, %v286_v24  ;;  %v305_v32 = vcombine.high %v286_v24, %v286_v24 }
  0x46   :  { %v257_v26 = vadd.f32 %v256_v21, %v229_v15  ;;  %v268_v27 = vmul.f32 %v363_v20, %v266_v23  ;;  %v301_v35 = vmul.f32 %v365_v29, %v299_v28  ;;  %v311_v36 = vcombine.high %v299_v28, %v299_v28 }
  0x47   :  { %v307_v38 = vmul.f32 %v366_v33, %v305_v32 }
  0x48   :  { %v263_v30 = vadd.f32 %v262_v22, %v257_v26  ;;  %v313_v40 = vmul.f32 %v367_v37, %v311_v36 }
  0x4a   :  { %v269_v34 = vadd.f32 %v268_v27, %v263_v30 }
  0x4c   :  { %v289_v4 = vadd.f32 %v288_v31, %v269_v34 }
  0x4e   :  { %v302_v39 = vadd.f32 %v301_v35, %v289_v4 }
  0x50   :  { %v308_v5 = vadd.f32 %v307_v38, %v302_v39 }
  0x52   :  { %v314_v41 = vadd.f32 %v313_v40, %v308_v5 }
  0x54   :  { %v368_v42 = vmul.f32 -1.442695, %v314_v41 }
  0x56   :  { %371 = vpow2.f32 %v368_v42 }
  0x60   :  { %v372_v43 = vpop.eup %371 }
  0x61   :  { %v318_v6 = vadd.f32 1.0, %v372_v43 }
  0x63   :  { %373 = vrcp.f32 %v318_v6 }
  0x6d   :  { %v374_v44 = vpop.eup %373 }
  0x6e   :  { %321 = vst [vmem:[#allocation2] sm:$0x1] %v374_v44 }
  0x6f   :  { %386 = shalt.err (!%p383_p4)
}
  0x70   :  { %s387_s0 = scalar_lea.hbm %s624_s7, 16 }
  0x71   :  { %p388_p5 = scmp.ne.s32.totalorder %s624_s7, %s387_s0  ;;  %p391_p6 = scmp.lt.u32.totalorder %s387_s0, %s624_s7 }
  0x73   :  { %p393_p7 = pnand %p391_p6, %p388_p5 }
  0x75   :  { %396 = shalt.err (!%p393_p7)
}
  0x76   :  { %331 = dma.vmem_to_hbm [thread:$0]  %s329_s26, 16, %s624_s7, [#allocation3]  }
  0x77   :  { %397 = dma.done.wait [#allocation3], 16  }
  0x78   :  { %398 = vsyncadd [#allocation3], 4294967280 }
  0x79   :  { %335 = vsyncpa [#allocation3], 1 }

</bundles_post_ra>
